<compile_context>
chip_gen: v5e
topology: v5e:2x2
jax: 0.10.0
libtpu: 0.0.40
codegen_flags: <defaults>
</compile_context>

<pallas_src>
import functools

import jax
import jax.numpy as jnp
from jax.experimental import pallas as pl
from jax.experimental.pallas import tpu as pltpu


def gaussian_net_kernel(x_ref, w1_ref, b1_ref, w2_ref, b2_ref, w3_ref, b3_ref,
                        mean_ref):
    # hidden1 = relu(x @ W1 + b1)
    h1 = jnp.dot(x_ref[...].astype(jnp.float32), w1_ref[...],
                 preferred_element_type=jnp.float32)
    h1 = jnp.maximum(h1 + b1_ref[...].astype(jnp.float32), 0.0)
    # hidden2 = relu(h1 @ W2 + b2)
    h2 = jnp.dot(h1.astype(w2_ref.dtype), w2_ref[...],
                 preferred_element_type=jnp.float32)
    h2 = jnp.maximum(h2 + b2_ref[...].astype(jnp.float32), 0.0)
    # mean = tanh(h2 @ W3 + b3)
    m = jnp.dot(h2.astype(w3_ref.dtype), w3_ref[...],
                preferred_element_type=jnp.float32)
    m = jnp.tanh(m + b3_ref[...].astype(jnp.float32))
    mean_ref[...] = m.astype(mean_ref.dtype)


@functools.partial(jax.jit, static_argnames=("block_b",))
def gaussian_network_forward(state, params, *, block_b=512):
    """GaussianNetwork forward in a single Pallas kernel.

    Returns (mean, var) just like the PyTorch module; var is a constant 1.0
    tensor produced in the wrapper (no kernel writeback needed)."""
    w1, b1, w2, b2, w3, b3 = params
    B, state_size = state.shape
    action_size = w3.shape[1]

    # Batch tile: multiple of 8 sublanes, no larger than the (padded) batch.
    tb = min(block_b, ((B + 7) // 8) * 8)
    tb = max(8, ((tb + 7) // 8) * 8)
    b_pad = ((B + tb - 1) // tb) * tb
    if b_pad != B:
        state = jnp.pad(state, ((0, b_pad - B), (0, 0)))
    grid = (b_pad // tb,)

    const = lambda i: (0, 0)  # weights/biases: fetched once, VMEM-resident
    mean_pad = pl.pallas_call(
        gaussian_net_kernel,
        out_shape=jax.ShapeDtypeStruct((b_pad, action_size), jnp.float32),
        grid=grid,
        in_specs=[
            pl.BlockSpec((tb, state_size), lambda i: (i, 0)),  # state tile
            pl.BlockSpec(w1.shape, const),
            pl.BlockSpec(b1.shape, const),
            pl.BlockSpec(w2.shape, const),
            pl.BlockSpec(b2.shape, const),
            pl.BlockSpec(w3.shape, const),
            pl.BlockSpec(b3.shape, const),
        ],
        out_specs=pl.BlockSpec((tb, action_size), lambda i: (i, 0)),
        compiler_params=pltpu.CompilerParams(
            dimension_semantics=("parallel",)),  # megacore split on v7x
    )(state, w1, b1, w2, b2, w3, b3)

    mean = mean_pad[:B]
    var = jnp.ones((B, action_size), jnp.float32)  # torch.full_like(mean, 1.0)
    return mean, var


def init_params(key, state_size, action_size, weight_dtype=jnp.float32):
    """PyTorch-Linear-style init: U(-1/sqrt(fan_in), 1/sqrt(fan_in)).
    Weights stored as (in_features, out_features); biases as (1, out)."""
    def linear(key, fan_in, fan_out):
        kw, kb = jax.random.split(key)
        bound = 1.0 / jnp.sqrt(fan_in)
        w = jax.random.uniform(kw, (fan_in, fan_out), jnp.float32, -bound, bound)
        b = jax.random.uniform(kb, (1, fan_out), jnp.float32, -bound, bound)
        return w.astype(weight_dtype), b.astype(jnp.float32)

    k1, k2, k3 = jax.random.split(key, 3)
    w1, b1 = linear(k1, state_size, 128)
    w2, b2 = linear(k2, 128, 32)
    w3, b3 = linear(k3, 32, action_size)
    return (w1, b1, w2, b2, w3, b3)


def reference_forward(state, params):
    """Pure-JAX reference for correctness check."""
    w1, b1, w2, b2, w3, b3 = params
    f32 = lambda a: a.astype(jnp.float32)
    h = jnp.maximum(state @ f32(w1) + b1, 0.0)
    h = jnp.maximum(h @ f32(w2) + b2, 0.0)
    mean = jnp.tanh(h @ f32(w3) + b3)
    return mean, jnp.full_like(mean, 1.0)


if __name__ == "__main__":
    state_size = 16
    action_size = 4

    key = jax.random.PRNGKey(0)
    k_params, k_state = jax.random.split(key)
    params = init_params(k_params, state_size, action_size)

    # Small case (B=2, pads to one 8-row tile) — matches the module's usage.
    state_small = jax.random.normal(k_state, (2, state_size), jnp.float32)
    mean, var = gaussian_network_forward(state_small, params)
    jax.block_until_ready((mean, var))
    ref_mean, ref_var = reference_forward(state_small, params)
    assert mean.shape == (2, action_size) and var.shape == (2, action_size)
    assert jnp.allclose(mean, ref_mean, atol=1e-5, rtol=1e-5)
    assert jnp.allclose(var, ref_var)

    # Larger ragged batch exercises the multi-tile grid + padding path.
    state_big = jax.random.normal(k_state, (300, state_size), jnp.float32)
    mean_b, var_b = gaussian_network_forward(state_big, params, block_b=128)
    jax.block_until_ready((mean_b, var_b))
    ref_mean_b, ref_var_b = reference_forward(state_big, params)
    assert mean_b.shape == (300, action_size)
    assert jnp.allclose(mean_b, ref_mean_b, atol=1e-5, rtol=1e-5)
    assert jnp.allclose(var_b, ref_var_b)

    print("KERNEL_OK")
</pallas_src>

<mosaic_0001>
module attributes {stable_mosaic.version = 11 : i64} {
  func.func @gaussian_net_kernel(%arg0: i32, %arg1: memref<8x16xf32, #tpu.memory_space<vmem>>, %arg2: memref<16x128xf32, #tpu.memory_space<vmem>>, %arg3: memref<1x128xf32, #tpu.memory_space<vmem>>, %arg4: memref<128x32xf32, #tpu.memory_space<vmem>>, %arg5: memref<1x32xf32, #tpu.memory_space<vmem>>, %arg6: memref<32x4xf32, #tpu.memory_space<vmem>>, %arg7: memref<1x4xf32, #tpu.memory_space<vmem>>, %arg8: memref<8x4xf32, #tpu.memory_space<vmem>>) attributes {dimension_semantics = [#tpu.dimension_semantics<parallel>], iteration_bounds = array<i64: 1>, scalar_prefetch = 0 : i64, scratch_operands = 0 : i64, tpu.core_type = #tpu.core_type<tc>, window_params = [{transform_indices = @transform_0, window_bounds = array<i64: 8, 16>}, {pipeline_mode = #tpu.pipeline_mode<synchronous>, transform_indices = @transform_1, window_bounds = array<i64: 16, 128>}, {pipeline_mode = #tpu.pipeline_mode<synchronous>, transform_indices = @transform_2, window_bounds = array<i64: 1, 128>}, {pipeline_mode = #tpu.pipeline_mode<synchronous>, transform_indices = @transform_3, window_bounds = array<i64: 128, 32>}, {pipeline_mode = #tpu.pipeline_mode<synchronous>, transform_indices = @transform_4, window_bounds = array<i64: 1, 32>}, {pipeline_mode = #tpu.pipeline_mode<synchronous>, transform_indices = @transform_5, window_bounds = array<i64: 32, 4>}, {pipeline_mode = #tpu.pipeline_mode<synchronous>, transform_indices = @transform_6, window_bounds = array<i64: 1, 4>}, {transform_indices = @transform_7, window_bounds = array<i64: 8, 4>}]} {
    %c0 = arith.constant 0 : index
    %c0_0 = arith.constant 0 : index
    %0 = vector.load %arg1[%c0, %c0_0] : memref<8x16xf32, #tpu.memory_space<vmem>>, vector<8x16xf32>
    %c0_1 = arith.constant 0 : index
    %c0_2 = arith.constant 0 : index
    %1 = vector.load %arg2[%c0_1, %c0_2] : memref<16x128xf32, #tpu.memory_space<vmem>>, vector<16x128xf32>
    %cst = arith.constant dense<0.000000e+00> : vector<8x128xf32>
    %2 = tpu.matmul %0, %1, %cst {dimension_numbers = #tpu.dot_dimension_numbers<[1], [0], [0], [1], [0, 0, 1, 1], [], []>} : vector<8x16xf32>, vector<16x128xf32>, vector<8x128xf32> -> vector<8x128xf32>
    %c0_3 = arith.constant 0 : index
    %c0_4 = arith.constant 0 : index
    %3 = vector.load %arg3[%c0_3, %c0_4] : memref<1x128xf32, #tpu.memory_space<vmem>>, vector<1x128xf32>
    %4 = vector.broadcast %3 : vector<1x128xf32> to vector<8x128xf32>
    %5 = arith.addf %2, %4 : vector<8x128xf32>
    %cst_5 = arith.constant 0.000000e+00 : f32
    %6 = vector.broadcast %cst_5 : f32 to vector<8x128xf32>
    %7 = arith.maximumf %5, %6 : vector<8x128xf32>
    %c0_6 = arith.constant 0 : index
    %c0_7 = arith.constant 0 : index
    %8 = vector.load %arg4[%c0_6, %c0_7] : memref<128x32xf32, #tpu.memory_space<vmem>>, vector<128x32xf32>
    %cst_8 = arith.constant dense<0.000000e+00> : vector<8x32xf32>
    %9 = tpu.matmul %7, %8, %cst_8 {dimension_numbers = #tpu.dot_dimension_numbers<[1], [0], [0], [1], [0, 0, 1, 1], [], []>} : vector<8x128xf32>, vector<128x32xf32>, vector<8x32xf32> -> vector<8x32xf32>
    %c0_9 = arith.constant 0 : index
    %c0_10 = arith.constant 0 : index
    %10 = vector.load %arg5[%c0_9, %c0_10] : memref<1x32xf32, #tpu.memory_space<vmem>>, vector<1x32xf32>
    %11 = vector.broadcast %10 : vector<1x32xf32> to vector<8x32xf32>
    %12 = arith.addf %9, %11 : vector<8x32xf32>
    %cst_11 = arith.constant 0.000000e+00 : f32
    %13 = vector.broadcast %cst_11 : f32 to vector<8x32xf32>
    %14 = arith.maximumf %12, %13 : vector<8x32xf32>
    %c0_12 = arith.constant 0 : index
    %c0_13 = arith.constant 0 : index
    %15 = vector.load %arg6[%c0_12, %c0_13] : memref<32x4xf32, #tpu.memory_space<vmem>>, vector<32x4xf32>
    %cst_14 = arith.constant dense<0.000000e+00> : vector<8x4xf32>
    %16 = tpu.matmul %14, %15, %cst_14 {dimension_numbers = #tpu.dot_dimension_numbers<[1], [0], [0], [1], [0, 0, 1, 1], [], []>} : vector<8x32xf32>, vector<32x4xf32>, vector<8x4xf32> -> vector<8x4xf32>
    %c0_15 = arith.constant 0 : index
    %c0_16 = arith.constant 0 : index
    %17 = vector.load %arg7[%c0_15, %c0_16] : memref<1x4xf32, #tpu.memory_space<vmem>>, vector<1x4xf32>
    %18 = vector.broadcast %17 : vector<1x4xf32> to vector<8x4xf32>
    %19 = arith.addf %16, %18 : vector<8x4xf32>
    %20 = math.tanh %19 : vector<8x4xf32>
    %c0_17 = arith.constant 0 : index
    %c0_18 = arith.constant 0 : index
    %21 = vector.load %arg8[%c0_17, %c0_18] : memref<8x4xf32, #tpu.memory_space<vmem>>, vector<8x4xf32>
    tpu.vector_store %arg8[%c0_17, %c0_18], %20 {strides = array<i32>} : memref<8x4xf32, #tpu.memory_space<vmem>>, vector<8x4xf32>,
    return
  }
  func.func @transform_0(%arg0: i32) -> (i32, i32) {
    %c0_i32 = arith.constant 0 : i32
    %c0_i32_0 = arith.constant 0 : i32
    return %arg0, %c0_i32 : i32, i32
  }
  func.func @transform_1(%arg0: i32) -> (i32, i32) {
    %c0_i32 = arith.constant 0 : i32
    %c0_i32_0 = arith.constant 0 : i32
    %c0_i32_1 = arith.constant 0 : i32
    return %c0_i32, %c0_i32_0 : i32, i32
  }
  func.func @transform_2(%arg0: i32) -> (i32, i32) {
    %c0_i32 = arith.constant 0 : i32
    %c0_i32_0 = arith.constant 0 : i32
    %c0_i32_1 = arith.constant 0 : i32
    return %c0_i32, %c0_i32_0 : i32, i32
  }
  func.func @transform_3(%arg0: i32) -> (i32, i32) {
    %c0_i32 = arith.constant 0 : i32
    %c0_i32_0 = arith.constant 0 : i32
    %c0_i32_1 = arith.constant 0 : i32
    return %c0_i32, %c0_i32_0 : i32, i32
  }
  func.func @transform_4(%arg0: i32) -> (i32, i32) {
    %c0_i32 = arith.constant 0 : i32
    %c0_i32_0 = arith.constant 0 : i32
    %c0_i32_1 = arith.constant 0 : i32
    return %c0_i32, %c0_i32_0 : i32, i32
  }
  func.func @transform_5(%arg0: i32) -> (i32, i32) {
    %c0_i32 = arith.constant 0 : i32
    %c0_i32_0 = arith.constant 0 : i32
    %c0_i32_1 = arith.constant 0 : i32
    return %c0_i32, %c0_i32_0 : i32, i32
  }
  func.func @transform_6(%arg0: i32) -> (i32, i32) {
    %c0_i32 = arith.constant 0 : i32
    %c0_i32_0 = arith.constant 0 : i32
    %c0_i32_1 = arith.constant 0 : i32
    return %c0_i32, %c0_i32_0 : i32, i32
  }
  func.func @transform_7(%arg0: i32) -> (i32, i32) {
    %c0_i32 = arith.constant 0 : i32
    %c0_i32_0 = arith.constant 0 : i32
    return %arg0, %c0_i32 : i32, i32
  }
}

</mosaic_0001>

<bundles_post_ra>
// kernel: gaussian_network_forward.1
= control target key start
LH: loop header
LB: loop body
LE: loop exit
PB: predicated region body
PF: predicated region fallthrough
CT: control target
= control target key end

     0   :  { %vm33_vm0 = vcmask 130048   ;;  %vm107_vm1 = vcmask 261120   ;;  %vm132_vm2 = vcmask 31744   ;;  %s266_s1 = inlined_call_operand.vmem [shape: f32[16,128], index: 1, kind: input, shape index: {}]   ;;  %s267_s0 = inlined_call_operand.vmem [shape: f32[8,16], index: 0, kind: input, shape index: {}]   ;;  %s268_s3 = inlined_call_operand.vmem [shape: f32[128,32], index: 3, kind: input, shape index: {}]   ;;  %s269_s2 = inlined_call_operand.vmem [shape: f32[1,128], index: 2, kind: input, shape index: {}]   ;;  %s270_s4 = inlined_call_operand.vmem [shape: f32[1,32], index: 4, kind: input, shape index: {}]   ;;  %s271_s5 = inlined_call_operand.vmem [shape: f32[32,4], index: 5, kind: input, shape index: {}]   ;;  %s272_s6 = inlined_call_operand.vmem [shape: f32[1,4], index: 6, kind: input, shape index: {}]   ;;  %s273_s7 = inlined_call_operand.vmem [shape: f32[8,4], index: 7, kind: output, shape index: {}]  }
   0x1   :  { %v28_v0 = vld [vmem:[%s266_s1 + $0x8] sm:$0xff]  ;;  %v27_v1 = vld [vmem:[%s266_s1] sm:$0xff]  ;;  %v73_v3 = vld [vmem:[%s268_s3 + $0x78] sm:$0xff] }
   0x2   :  { %51 = vmatpush.msra.mxu0 %v28_v0  ;;  %v26_v2 = vld [vmem:[%s267_s0] sm:$0xff]  ;;  %v72_v4 = vld [vmem:[%s268_s3 + $0x70] sm:$0xff]  ;;  %78 = vmatpush.msra.mxu1 %v73_v3  ;;  %v71_v5 = vld [vmem:[%s268_s3 + $0x68] sm:$0xff] }
   0x3   :  { %v70_v6 = vld [vmem:[%s268_s3 + $0x60] sm:$0xff]  ;;  %v69_v7 = vld [vmem:[%s268_s3 + $0x58] sm:$0xff]  ;;  %v68_v8 = vld [vmem:[%s268_s3 + $0x50] sm:$0xff] }
   0x4   :  { %52 = vmatpush.msra.mxu0 %v27_v1  ;;  %79 = vmatpush.msra.mxu1 %v72_v4  ;;  %v67_v9 = vld [vmem:[%s268_s3 + $0x48] sm:$0xff]  ;;  %v66_v10 = vld [vmem:[%s268_s3 + $0x40] sm:$0xff]  ;;  %v65_v11 = vld [vmem:[%s268_s3 + $0x38] sm:$0xff] }
   0x5   :  { %138 = vmatmul.msk.f32.vlgmr.msra.gmra.mxu0 %vm33_vm0, %v26_v2  ;;  %v64_v12 = vld [vmem:[%s268_s3 + $0x30] sm:$0xff]  ;;  %v63_v13 = vld [vmem:[%s268_s3 + $0x28] sm:$0xff]  ;;  %v62_v14 = vld [vmem:[%s268_s3 + $0x20] sm:$0xff] }
   0x6   :  { %80 = vmatpush.msra.mxu1 %v71_v5  ;;  %v61_v15 = vld [vmem:[%s268_s3 + $0x18] sm:$0xff]  ;;  %v60_v16 = vld [vmem:[%s268_s3 + $0x10] sm:$0xff]  ;;  %v59_v17 = vld [vmem:[%s268_s3 + $0x8] sm:$0xff] }
   0x7   :  { %v58_v18 = vld [vmem:[%s268_s3] sm:$0xff]  ;;  %v102_v19 = vld [vmem:[%s271_s5 + $0x18] sm:$0xff]  ;;  %v101_v24 = vld [vmem:[%s271_s5 + $0x10] sm:$0xff] }
   0x8   :  { %81 = vmatpush.msra.mxu1 %v70_v6  ;;  %123 = vmatpush.msra.mxu2 %v102_v19  ;;  %v140_v20 = vld [vmem:[%s269_s2] ss:$0 sm:$0xff]  ;;  %v100_v25 = vld [vmem:[%s271_s5 + $0x8] sm:$0xff] }
   0x9   :  { %v99_v26 = vld [vmem:[%s271_s5] sm:$0xff] }
   0xa   :  { %82 = vmatpush.msra.mxu1 %v69_v7  ;;  %124 = vmatpush.msra.mxu2 %v101_v24  ;;  %v141_v27 = vld [vmem:[%s270_s4] ss:$0 sm:$0xff] }
   0xb   :  { %v142_v31 = vld [vmem:[%s272_s6] ss:$0 sm:$0xff] }
   0xc   :  { %83 = vmatpush.msra.mxu1 %v68_v8  ;;  %125 = vmatpush.msra.mxu2 %v100_v25 }
   0xe   :  { %84 = vmatpush.msra.mxu1 %v67_v9  ;;  %126 = vmatpush.msra.mxu2 %v99_v26 }
  0x10   :  { %85 = vmatpush.msra.mxu1 %v66_v10 }
  0x12   :  { %86 = vmatpush.msra.mxu1 %v65_v11 }
  0x14   :  { %87 = vmatpush.msra.mxu1 %v64_v12 }
  0x16   :  { %88 = vmatpush.msra.mxu1 %v63_v13 }
  0x18   :  { %89 = vmatpush.msra.mxu1 %v62_v14 }
  0x1a   :  { %90 = vmatpush.msra.mxu1 %v61_v15 }
  0x1c   :  { %91 = vmatpush.msra.mxu1 %v60_v16 }
  0x1e   :  { %92 = vmatpush.msra.mxu1 %v59_v17 }
  0x20   :  { %93 = vmatpush.msra.mxu1 %v58_v18 }
  0x82   :  { %v54_v21 = vpop.f32.mrf.mxu0 }
  0x83   :  { %v55_v22 = vadd.f32 %v140_v20, %v54_v21 }
  0x85   :  { %v57_v23 = vmax.f32 %v55_v22, 0.0 }
  0x87   :  { %94 = vmatmul.f32.vlgmr.msra.gmra.mxu1 %v57_v23 }
 0x104   :  { %v95_v28 = vpop.f32.mrf.mxu1 }
 0x105   :  { %v96_v29 = vadd.f32 %v141_v27, %v95_v28 }
 0x107   :  { %v98_v30 = vmax.f32 %v96_v29, 0.0 }
 0x109   :  { %139 = vmatmul.msk.f32.vlgmr.msra.gmra.mxu2 %vm107_vm1, %v98_v30 }
 0x18c   :  { %v128_v32 = vpop.f32.mrf.mxu2 }
 0x18d   :  { %v129_v33 = vadd.f32 %v142_v31, %v128_v32 }
 0x18f   :  { %143 = vtanh.f32 %v129_v33 }
 0x195   :  { %v144_v34 = vpop.eup %143 }
 0x196   :  { %133 = vst.msk [vmem:[%s273_s7] sm:$0xff] %vm132_vm2, %v144_v34 }

</bundles_post_ra>
